<compile_context>
chip_gen: v6e
topology: v6e:2x2x1
jax: 0.10.0
libtpu: 0.0.40
codegen_flags: <defaults>
</compile_context>

<pallas_src>
import jax
import jax.numpy as jnp
from jax.experimental import pallas as pl
from jax.experimental.pallas import tpu as pltpu

INPUT_SIZE = 28 * 28     # 784
HIDDEN1 = 128
HIDDEN2 = 64
OUTPUT_SIZE = 10

HIDDEN2_PAD = 128        # hidden2 zero-padded to a full lane width (exact)
TILE_B_MAX = 512         # max batch rows per grid step (VMEM-safe on v5e)


def _round_up(n, m):
    return ((n + m - 1) // m) * m


def _decoder_kernel(x_ref, w1_ref, b1_ref, w2_ref, b2_ref, w3_ref, b3_ref, o_ref):
    """One batch tile: three matmuls + biases, ReLU on the first two."""
    x = x_ref[...]                                                    # (TB, 784)

    h1 = jnp.dot(x, w1_ref[...], preferred_element_type=jnp.float32)
    h1 = jnp.maximum(h1 + b1_ref[...], 0.0)                           # (TB, 128)

    h2 = jnp.dot(h1, w2_ref[...], preferred_element_type=jnp.float32)
    h2 = jnp.maximum(h2 + b2_ref[...], 0.0)                           # (TB, 128); cols 64: are 0

    out = jnp.dot(h2, w3_ref[...], preferred_element_type=jnp.float32)
    o_ref[...] = (out + b3_ref[...]).astype(o_ref.dtype)              # (TB, 10)


def prepare_params(params):
    """One-time param prep: f32 cast + zero-pad hidden2 to 128 lanes (exact)."""
    w1, b1, w2, b2, w3, b3 = params
    f32 = jnp.float32
    w1p = jnp.asarray(w1, f32)                                             # (784, 128)
    b1p = jnp.asarray(b1, f32).reshape(1, HIDDEN1)                         # (1, 128)
    w2p = jnp.pad(jnp.asarray(w2, f32), ((0, 0), (0, HIDDEN2_PAD - HIDDEN2)))   # (128, 128)
    b2p = jnp.pad(jnp.asarray(b2, f32).reshape(1, HIDDEN2),
                  ((0, 0), (0, HIDDEN2_PAD - HIDDEN2)))                    # (1, 128)
    w3p = jnp.pad(jnp.asarray(w3, f32), ((0, HIDDEN2_PAD - HIDDEN2), (0, 0)))   # (128, 10)
    b3p = jnp.asarray(b3, f32).reshape(1, OUTPUT_SIZE)                     # (1, 10)
    return (w1p, b1p, w2p, b2p, w3p, b3p)


def decoder_forward(x, prepared_params):
    """x: any shape with trailing 28*28 elements per example (e.g. (B,1,28,28))."""
    w1p, b1p, w2p, b2p, w3p, b3p = prepared_params
    x2d = x.reshape(-1, INPUT_SIZE).astype(jnp.float32)   # mirrors x.view(-1, 784)
    B = x2d.shape[0]

    # Only pad the batch to a multiple of 8 (and only if actually needed).
    Bp = _round_up(B, 8)
    if Bp != B:
        x2d = jnp.pad(x2d, ((0, Bp - B), (0, 0)))

    # One big tile when the batch fits; otherwise 512-row tiles (the grid then
    # naturally has >=2 'parallel' steps for v7x's 2 TensorCores). The last
    # grid block may be partial; Pallas masks the ragged reads/writes.
    tile_b = min(TILE_B_MAX, Bp)
    grid = (pl.cdiv(Bp, tile_b),)

    # Weights/biases are tiny: fully resident in VMEM every step; only the
    # batch dimension of x / out is tiled.
    full = lambda shape: pl.BlockSpec(shape, lambda i: (0, 0))

    out_p = pl.pallas_call(
        _decoder_kernel,
        out_shape=jax.ShapeDtypeStruct((Bp, OUTPUT_SIZE), jnp.float32),
        grid_spec=pltpu.PrefetchScalarGridSpec(
            num_scalar_prefetch=0,
            grid=grid,
            in_specs=[
                pl.BlockSpec((tile_b, INPUT_SIZE), lambda i: (i, 0)),  # x tile (K=784, full dim)
                full((INPUT_SIZE, HIDDEN1)),                           # w1 (784, 128)
                full((1, HIDDEN1)),                                    # b1
                full((HIDDEN1, HIDDEN2_PAD)),                          # w2 (128, 128)
                full((1, HIDDEN2_PAD)),                                # b2
                full((HIDDEN2_PAD, OUTPUT_SIZE)),                      # w3 (128, 10)
                full((1, OUTPUT_SIZE)),                                # b3
            ],
            out_specs=pl.BlockSpec((tile_b, OUTPUT_SIZE), lambda i: (i, 0)),
        ),
        compiler_params=pltpu.CompilerParams(
            dimension_semantics=("parallel",),
        ),
    )(x2d, w1p, b1p, w2p, b2p, w3p, b3p)

    # Drop any padded batch rows (no column slicing needed anymore).
    return out_p if Bp == B else out_p[:B]


def init_params(key):
    """Deterministic init mimicking PyTorch nn.Linear default (U[-1/sqrt(fan_in), +])."""
    def linear(key, fan_in, fan_out):
        kw, kb = jax.random.split(key)
        bound = 1.0 / jnp.sqrt(jnp.float32(fan_in))
        # stored as (in, out) so the kernel does x @ W
        w = jax.random.uniform(kw, (fan_in, fan_out), jnp.float32, -bound, bound)
        b = jax.random.uniform(kb, (1, fan_out), jnp.float32, -bound, bound)
        return w, b

    k1, k2, k3 = jax.random.split(key, 3)
    w1, b1 = linear(k1, INPUT_SIZE, HIDDEN1)
    w2, b2 = linear(k2, HIDDEN1, HIDDEN2)
    w3, b3 = linear(k3, HIDDEN2, OUTPUT_SIZE)
    return (w1, b1, w2, b2, w3, b3)


def reference_forward(x, params):
    """Pure-JAX reference for correctness."""
    w1, b1, w2, b2, w3, b3 = params
    x2d = x.reshape(-1, INPUT_SIZE).astype(jnp.float32)
    h1 = jax.nn.relu(x2d @ w1 + b1)
    h2 = jax.nn.relu(h1 @ w2 + b2)
    return h2 @ w3 + b3


if __name__ == "__main__":
    key = jax.random.PRNGKey(0)
    kx, kp = jax.random.split(key)

    B = 16  # small batch; wrapper handles any B (pads rows only if B % 8 != 0)
    x = jax.random.normal(kx, (B, 1, 28, 28), dtype=jnp.float32)
    params = init_params(kp)
    prepared = prepare_params(params)   # one-time weight prep (hoisted out of forward)

    out = decoder_forward(x, prepared)
    out = jax.block_until_ready(out)

    ref = reference_forward(x, params)
    assert out.shape == (B, OUTPUT_SIZE)
    assert jnp.allclose(out, ref, atol=1e-4, rtol=1e-4), "mismatch vs reference"

    print("KERNEL_OK")
</pallas_src>

<mosaic_0001>
module attributes {stable_mosaic.version = 11 : i64} {
  func.func @_decoder_kernel(%arg0: i32, %arg1: memref<16x784xf32, #tpu.memory_space<vmem>>, %arg2: memref<784x128xf32, #tpu.memory_space<vmem>>, %arg3: memref<1x128xf32, #tpu.memory_space<vmem>>, %arg4: memref<128x128xf32, #tpu.memory_space<vmem>>, %arg5: memref<1x128xf32, #tpu.memory_space<vmem>>, %arg6: memref<128x10xf32, #tpu.memory_space<vmem>>, %arg7: memref<1x10xf32, #tpu.memory_space<vmem>>, %arg8: memref<16x10xf32, #tpu.memory_space<vmem>>) attributes {dimension_semantics = [#tpu.dimension_semantics<parallel>], iteration_bounds = array<i64: 1>, scalar_prefetch = 0 : i64, scratch_operands = 0 : i64, tpu.core_type = #tpu.core_type<tc>, window_params = [{transform_indices = @transform_0, window_bounds = array<i64: 16, 784>}, {pipeline_mode = #tpu.pipeline_mode<synchronous>, transform_indices = @transform_1, window_bounds = array<i64: 784, 128>}, {pipeline_mode = #tpu.pipeline_mode<synchronous>, transform_indices = @transform_2, window_bounds = array<i64: 1, 128>}, {pipeline_mode = #tpu.pipeline_mode<synchronous>, transform_indices = @transform_3, window_bounds = array<i64: 128, 128>}, {pipeline_mode = #tpu.pipeline_mode<synchronous>, transform_indices = @transform_4, window_bounds = array<i64: 1, 128>}, {pipeline_mode = #tpu.pipeline_mode<synchronous>, transform_indices = @transform_5, window_bounds = array<i64: 128, 10>}, {pipeline_mode = #tpu.pipeline_mode<synchronous>, transform_indices = @transform_6, window_bounds = array<i64: 1, 10>}, {transform_indices = @transform_7, window_bounds = array<i64: 16, 10>}]} {
    %c0 = arith.constant 0 : index
    %c0_0 = arith.constant 0 : index
    %0 = vector.load %arg1[%c0, %c0_0] : memref<16x784xf32, #tpu.memory_space<vmem>>, vector<16x784xf32>
    %c0_1 = arith.constant 0 : index
    %c0_2 = arith.constant 0 : index
    %1 = vector.load %arg2[%c0_1, %c0_2] : memref<784x128xf32, #tpu.memory_space<vmem>>, vector<784x128xf32>
    %cst = arith.constant dense<0.000000e+00> : vector<16x128xf32>
    %2 = tpu.matmul %0, %1, %cst {dimension_numbers = #tpu.dot_dimension_numbers<[1], [0], [0], [1], [0, 0, 1, 1], [], []>} : vector<16x784xf32>, vector<784x128xf32>, vector<16x128xf32> -> vector<16x128xf32>
    %c0_3 = arith.constant 0 : index
    %c0_4 = arith.constant 0 : index
    %3 = vector.load %arg3[%c0_3, %c0_4] : memref<1x128xf32, #tpu.memory_space<vmem>>, vector<1x128xf32>
    %4 = vector.broadcast %3 : vector<1x128xf32> to vector<16x128xf32>
    %5 = arith.addf %2, %4 : vector<16x128xf32>
    %cst_5 = arith.constant 0.000000e+00 : f32
    %6 = vector.broadcast %cst_5 : f32 to vector<16x128xf32>
    %7 = arith.maximumf %5, %6 : vector<16x128xf32>
    %c0_6 = arith.constant 0 : index
    %c0_7 = arith.constant 0 : index
    %8 = vector.load %arg4[%c0_6, %c0_7] : memref<128x128xf32, #tpu.memory_space<vmem>>, vector<128x128xf32>
    %cst_8 = arith.constant dense<0.000000e+00> : vector<16x128xf32>
    %9 = tpu.matmul %7, %8, %cst_8 {dimension_numbers = #tpu.dot_dimension_numbers<[1], [0], [0], [1], [0, 0, 1, 1], [], []>} : vector<16x128xf32>, vector<128x128xf32>, vector<16x128xf32> -> vector<16x128xf32>
    %c0_9 = arith.constant 0 : index
    %c0_10 = arith.constant 0 : index
    %10 = vector.load %arg5[%c0_9, %c0_10] : memref<1x128xf32, #tpu.memory_space<vmem>>, vector<1x128xf32>
    %11 = vector.broadcast %10 : vector<1x128xf32> to vector<16x128xf32>
    %12 = arith.addf %9, %11 : vector<16x128xf32>
    %cst_11 = arith.constant 0.000000e+00 : f32
    %13 = vector.broadcast %cst_11 : f32 to vector<16x128xf32>
    %14 = arith.maximumf %12, %13 : vector<16x128xf32>
    %c0_12 = arith.constant 0 : index
    %c0_13 = arith.constant 0 : index
    %15 = vector.load %arg6[%c0_12, %c0_13] : memref<128x10xf32, #tpu.memory_space<vmem>>, vector<128x10xf32>
    %cst_14 = arith.constant dense<0.000000e+00> : vector<16x10xf32>
    %16 = tpu.matmul %14, %15, %cst_14 {dimension_numbers = #tpu.dot_dimension_numbers<[1], [0], [0], [1], [0, 0, 1, 1], [], []>} : vector<16x128xf32>, vector<128x10xf32>, vector<16x10xf32> -> vector<16x10xf32>
    %c0_15 = arith.constant 0 : index
    %c0_16 = arith.constant 0 : index
    %17 = vector.load %arg7[%c0_15, %c0_16] : memref<1x10xf32, #tpu.memory_space<vmem>>, vector<1x10xf32>
    %18 = vector.broadcast %17 : vector<1x10xf32> to vector<16x10xf32>
    %19 = arith.addf %16, %18 : vector<16x10xf32>
    %c0_17 = arith.constant 0 : index
    %c0_18 = arith.constant 0 : index
    %20 = vector.load %arg8[%c0_17, %c0_18] : memref<16x10xf32, #tpu.memory_space<vmem>>, vector<16x10xf32>
    tpu.vector_store %arg8[%c0_17, %c0_18], %19 {strides = array<i32>} : memref<16x10xf32, #tpu.memory_space<vmem>>, vector<16x10xf32>,
    return
  }
  func.func @transform_0(%arg0: i32) -> (i32, i32) {
    %c0_i32 = arith.constant 0 : i32
    %c0_i32_0 = arith.constant 0 : i32
    return %arg0, %c0_i32 : i32, i32
  }
  func.func @transform_1(%arg0: i32) -> (i32, i32) {
    %c0_i32 = arith.constant 0 : i32
    %c0_i32_0 = arith.constant 0 : i32
    %c0_i32_1 = arith.constant 0 : i32
    return %c0_i32, %c0_i32_0 : i32, i32
  }
  func.func @transform_2(%arg0: i32) -> (i32, i32) {
    %c0_i32 = arith.constant 0 : i32
    %c0_i32_0 = arith.constant 0 : i32
    %c0_i32_1 = arith.constant 0 : i32
    return %c0_i32, %c0_i32_0 : i32, i32
  }
  func.func @transform_3(%arg0: i32) -> (i32, i32) {
    %c0_i32 = arith.constant 0 : i32
    %c0_i32_0 = arith.constant 0 : i32
    %c0_i32_1 = arith.constant 0 : i32
    return %c0_i32, %c0_i32_0 : i32, i32
  }
  func.func @transform_4(%arg0: i32) -> (i32, i32) {
    %c0_i32 = arith.constant 0 : i32
    %c0_i32_0 = arith.constant 0 : i32
    %c0_i32_1 = arith.constant 0 : i32
    return %c0_i32, %c0_i32_0 : i32, i32
  }
  func.func @transform_5(%arg0: i32) -> (i32, i32) {
    %c0_i32 = arith.constant 0 : i32
    %c0_i32_0 = arith.constant 0 : i32
    %c0_i32_1 = arith.constant 0 : i32
    return %c0_i32, %c0_i32_0 : i32, i32
  }
  func.func @transform_6(%arg0: i32) -> (i32, i32) {
    %c0_i32 = arith.constant 0 : i32
    %c0_i32_0 = arith.constant 0 : i32
    %c0_i32_1 = arith.constant 0 : i32
    return %c0_i32, %c0_i32_0 : i32, i32
  }
  func.func @transform_7(%arg0: i32) -> (i32, i32) {
    %c0_i32 = arith.constant 0 : i32
    %c0_i32_0 = arith.constant 0 : i32
    return %arg0, %c0_i32 : i32, i32
  }
}

</mosaic_0001>

<bundles_post_ra>
// kernel: tpu_custom_call.1
= control target key start
LH: loop header
LB: loop body
LE: loop exit
PB: predicated region body
PF: predicated region fallthrough
CT: control target
= control target key end

     0   :  { %12 = vsyncpa [#allocation3], 0  ;;  %s1178_s0 = inlined_call_operand.hbm [shape: f32[16,784], index: 0, kind: input, shape index: {}]   ;;  %s1179_s1 = inlined_call_operand.hbm [shape: f32[784,128], index: 1, kind: input, shape index: {}]   ;;  %s1180_s2 = inlined_call_operand.vmem [shape: f32[1,128], index: 2, kind: input, shape index: {}]   ;;  %s1181_s3 = inlined_call_operand.vmem [shape: f32[128,128], index: 3, kind: input, shape index: {}]   ;;  %s1182_s4 = inlined_call_operand.vmem [shape: f32[1,128], index: 4, kind: input, shape index: {}]   ;;  %s1183_s5 = inlined_call_operand.vmem [shape: f32[128,10], index: 5, kind: input, shape index: {}]   ;;  %s1184_s6 = inlined_call_operand.vmem [shape: f32[1,10], index: 6, kind: input, shape index: {}]   ;;  %s1185_s7 = inlined_call_operand.hbm [shape: f32[16,10], index: 7, kind: output, shape index: {}]  }
   0x1   :  { %13 = vsyncpa [#allocation6], 0 }
   0x2   :  { %14 = vsyncpa [#allocation4], 0  ;;  %s1011_s24 = smov [#allocation2]  }
   0x3   :  { %s20_s25 = sshll.u32 %s1011_s24, 4  ;;  %s21_s25 = int_to_ptr.vmem [resolvable:$true] %s20_s25 }
   0x4   :  { %s953_s26 = scalar_lea.vmem %s21_s25, 1792  ;;  %p958_p1 = scmp.lt.s32.totalorder %s21_s25, %s21_s25 }
   0x5   :  { %p954_p0 = scmp.ne.s32.totalorder %s21_s25, %s953_s26  ;;  %p959_p2 = scmp.lt.s32.totalorder %s953_s26, %s953_s26 }
   0x7   :  { %p960_p3 = por %p959_p2, %p958_p1 }
   0x9   :  { %p961_p4 = pnand %p960_p3, %p954_p0 }
   0xb   :  { %964 = shalt.err (!%p961_p4)
}
   0xc   :  { %s1012_s27 = smov 896   ;;  %s1013_s28 = smov 56  }
   0xd   :  { %26 = dma.hbm_to_vmem [thread:$0]  %s1178_s0, 1792, %s21_s25, [#allocation3], %s1012_s27, %s1012_s27, %s1013_s28  }
   0xe   :  { %s1014_s8 = smov [#allocation5]  }
   0xf   :  { %s32_s9 = sshll.u32 %s1014_s8, 4  ;;  %s33_s9 = int_to_ptr.vmem [resolvable:$true] %s32_s9 }
  0x10   :  { %s973_s10 = scalar_lea.vmem %s33_s9, 12544  ;;  %p978_p6 = scmp.lt.s32.totalorder %s33_s9, %s33_s9 }
  0x11   :  { %p974_p5 = scmp.ne.s32.totalorder %s33_s9, %s973_s10  ;;  %p979_p7 = scmp.lt.s32.totalorder %s973_s10, %s973_s10 }
  0x13   :  { %p980_p8 = por %p979_p7, %p978_p6 }
  0x15   :  { %p981_p9 = pnand %p980_p8, %p974_p5 }
  0x17   :  { %984 = shalt.err (!%p981_p9)
}
  0x18   :  { %s1015_s11 = smov 128   ;;  %s1016_s12 = smov 8  }
  0x19   :  { %38 = dma.hbm_to_vmem [thread:$0]  %s1179_s1, 12544, %s33_s9, [#allocation6], %s1015_s11, %s1015_s11, %s1016_s12  }
  0x1a   :  { %1005 = dma.done.wait [#allocation3], 1792  }
  0x1b   :  { %1006 = vsyncadd [#allocation3], 4294965504 }
  0x1c   :  { %1007 = dma.done.wait [#allocation6], 12544  }
  0x1d   :  { %1008 = vsyncadd [#allocation6], 4294954752  ;;  %v100_v0 = vld [vmem:[#allocation5 + $0xf8] sm:$0xff]  ;;  %v99_v2 = vld [vmem:[#allocation5 + $0xf0] sm:$0xff]  ;;  %vm174_vm0 = vcmask 130048   ;;  %vm681_vm1 = vcmask 80896  }
  0x1e   :  { %v84_v1 = vld [vmem:[#allocation5 + $0x78] sm:$0xff]  ;;  %707 = vmatprep.subr.mxu0 %v100_v0  ;;  %v83_v4 = vld [vmem:[#allocation5 + $0x70] sm:$0xff]  ;;  %v98_v6 = vld [vmem:[#allocation5 + $0xe8] sm:$0xff] }
  0x1f   :  { %v132_v3 = vld [vmem:[#allocation5 + $0x1f8] sm:$0xff]  ;;  %708 = vmatpush3.msra.mxu0 %v84_v1  ;;  %v131_v7 = vld [vmem:[#allocation5 + $0x1f0] sm:$0xff]  ;;  %v82_v8 = vld [vmem:[#allocation5 + $0x68] sm:$0xff] }
  0x20   :  { %v116_v5 = vld [vmem:[#allocation5 + $0x178] sm:$0xff]  ;;  %745 = vmatprep.subr.mxu1 %v132_v3  ;;  %709 = vmatprep.subr.mxu0 %v99_v2  ;;  %v115_v9 = vld [vmem:[#allocation5 + $0x170] sm:$0xff]  ;;  %v130_v10 = vld [vmem:[#allocation5 + $0x1e8] sm:$0xff] }
  0x21   :  { %746 = vmatpush3.msra.mxu1 %v116_v5  ;;  %710 = vmatpush3.msra.mxu0 %v83_v4  ;;  %v97_v11 = vld [vmem:[#allocation5 + $0xe0] sm:$0xff]  ;;  %v114_v12 = vld [vmem:[#allocation5 + $0x168] sm:$0xff]  ;;  %v96_v15 = vld [vmem:[#allocation5 + $0xd8] sm:$0xff] }
  0x22   :  { %747 = vmatprep.subr.mxu1 %v131_v7  ;;  %711 = vmatprep.subr.mxu0 %v98_v6  ;;  %v81_v13 = vld [vmem:[#allocation5 + $0x60] sm:$0xff]  ;;  %v80_v17 = vld [vmem:[#allocation5 + $0x58] sm:$0xff]  ;;  %v95_v19 = vld [vmem:[#allocation5 + $0xd0] sm:$0xff] }
  0x23   :  { %748 = vmatpush3.msra.mxu1 %v115_v9  ;;  %v129_v14 = vld [vmem:[#allocation5 + $0x1e0] sm:$0xff]  ;;  %712 = vmatpush3.msra.mxu0 %v82_v8  ;;  %v128_v18 = vld [vmem:[#allocation5 + $0x1d8] sm:$0xff]  ;;  %v79_v21 = vld [vmem:[#allocation5 + $0x50] sm:$0xff] }
  0x24   :  { %749 = vmatprep.subr.mxu1 %v130_v10  ;;  %v113_v16 = vld [vmem:[#allocation5 + $0x160] sm:$0xff]  ;;  %713 = vmatprep.subr.mxu0 %v97_v11  ;;  %v112_v20 = vld [vmem:[#allocation5 + $0x158] sm:$0xff]  ;;  %v127_v22 = vld [vmem:[#allocation5 + $0x1d0] sm:$0xff] }
  0x25   :  { %750 = vmatpush3.msra.mxu1 %v114_v12  ;;  %714 = vmatpush3.msra.mxu0 %v81_v13  ;;  %v94_v23 = vld [vmem:[#allocation5 + $0xc8] sm:$0xff]  ;;  %v111_v24 = vld [vmem:[#allocation5 + $0x150] sm:$0xff]  ;;  %v93_v27 = vld [vmem:[#allocation5 + $0xc0] sm:$0xff] }
  0x26   :  { %751 = vmatprep.subr.mxu1 %v129_v14  ;;  %715 = vmatprep.subr.mxu0 %v96_v15  ;;  %v78_v25 = vld [vmem:[#allocation5 + $0x48] sm:$0xff]  ;;  %v77_v29 = vld [vmem:[#allocation5 + $0x40] sm:$0xff]  ;;  %v92_v31 = vld [vmem:[#allocation5 + $0xb8] sm:$0xff] }
  0x27   :  { %752 = vmatpush3.msra.mxu1 %v113_v16  ;;  %716 = vmatpush3.msra.mxu0 %v80_v17  ;;  %v126_v26 = vld [vmem:[#allocation5 + $0x1c8] sm:$0xff]  ;;  %v125_v30 = vld [vmem:[#allocation5 + $0x1c0] sm:$0xff]  ;;  %v76_v33 = vld [vmem:[#allocation5 + $0x38] sm:$0xff] }
  0x28   :  { %753 = vmatprep.subr.mxu1 %v128_v18  ;;  %717 = vmatprep.subr.mxu0 %v95_v19  ;;  %v110_v28 = vld [vmem:[#allocation5 + $0x148] sm:$0xff]  ;;  %v109_v32 = vld [vmem:[#allocation5 + $0x140] sm:$0xff]  ;;  %v124_v34 = vld [vmem:[#allocation5 + $0x1b8] sm:$0xff] }
  0x29   :  { %754 = vmatpush3.msra.mxu1 %v112_v20  ;;  %718 = vmatpush3.msra.mxu0 %v79_v21  ;;  %v91_v35 = vld [vmem:[#allocation5 + $0xb0] sm:$0xff]  ;;  %v108_v36 = vld [vmem:[#allocation5 + $0x138] sm:$0xff]  ;;  %v90_v39 = vld [vmem:[#allocation5 + $0xa8] sm:$0xff] }
  0x2a   :  { %755 = vmatprep.subr.mxu1 %v127_v22  ;;  %719 = vmatprep.subr.mxu0 %v94_v23  ;;  %v75_v37 = vld [vmem:[#allocation5 + $0x30] sm:$0xff]  ;;  %v74_v41 = vld [vmem:[#allocation5 + $0x28] sm:$0xff]  ;;  %v89_v43 = vld [vmem:[#allocation5 + $0xa0] sm:$0xff] }
  0x2b   :  { %756 = vmatpush3.msra.mxu1 %v111_v24  ;;  %720 = vmatpush3.msra.mxu0 %v78_v25  ;;  %v123_v38 = vld [vmem:[#allocation5 + $0x1b0] sm:$0xff]  ;;  %v122_v42 = vld [vmem:[#allocation5 + $0x1a8] sm:$0xff]  ;;  %v73_v45 = vld [vmem:[#allocation5 + $0x20] sm:$0xff] }
  0x2c   :  { %757 = vmatprep.subr.mxu1 %v126_v26  ;;  %721 = vmatprep.subr.mxu0 %v93_v27  ;;  %v107_v40 = vld [vmem:[#allocation5 + $0x130] sm:$0xff]  ;;  %v106_v44 = vld [vmem:[#allocation5 + $0x128] sm:$0xff]  ;;  %v121_v46 = vld [vmem:[#allocation5 + $0x1a0] sm:$0xff] }
  0x2d   :  { %758 = vmatpush3.msra.mxu1 %v110_v28  ;;  %722 = vmatpush3.msra.mxu0 %v77_v29  ;;  %v88_v47 = vld [vmem:[#allocation5 + $0x98] sm:$0xff]  ;;  %v105_v48 = vld [vmem:[#allocation5 + $0x120] sm:$0xff]  ;;  %v87_v51 = vld [vmem:[#allocation5 + $0x90] sm:$0xff] }
  0x2e   :  { %759 = vmatprep.subr.mxu1 %v125_v30  ;;  %723 = vmatprep.subr.mxu0 %v92_v31  ;;  %v72_v49 = vld [vmem:[#allocation5 + $0x18] sm:$0xff]  ;;  %v71_v53 = vld [vmem:[#allocation5 + $0x10] sm:$0xff]  ;;  %v86_v55 = vld [vmem:[#allocation5 + $0x88] sm:$0xff] }
  0x2f   :  { %760 = vmatpush3.msra.mxu1 %v109_v32  ;;  %724 = vmatpush3.msra.mxu0 %v76_v33  ;;  %v120_v50 = vld [vmem:[#allocation5 + $0x198] sm:$0xff]  ;;  %v119_v54 = vld [vmem:[#allocation5 + $0x190] sm:$0xff]  ;;  %v70_v57 = vld [vmem:[#allocation5 + $0x8] sm:$0xff] }
  0x30   :  { %761 = vmatprep.subr.mxu1 %v124_v34  ;;  %725 = vmatprep.subr.mxu0 %v91_v35  ;;  %v104_v52 = vld [vmem:[#allocation5 + $0x118] sm:$0xff]  ;;  %v103_v56 = vld [vmem:[#allocation5 + $0x110] sm:$0xff]  ;;  %v118_v58 = vld [vmem:[#allocation5 + $0x188] sm:$0xff] }
  0x31   :  { %762 = vmatpush3.msra.mxu1 %v108_v36  ;;  %726 = vmatpush3.msra.mxu0 %v75_v37  ;;  %v85_v59 = vld [vmem:[#allocation5 + $0x80] sm:$0xff]  ;;  %v56_v60 = vld [vmem:[#allocation2 + $0x8] sm:$0xff]  ;;  %v102_v62 = vld [vmem:[#allocation5 + $0x108] sm:$0xff] }
  0x32   :  { %763 = vmatprep.subr.mxu1 %v123_v38  ;;  %727 = vmatprep.subr.mxu0 %v90_v39  ;;  %v69_v61 = vld [vmem:[#allocation5] sm:$0xff]  ;;  %v55_v63 = vld [vmem:[#allocation2] sm:$0xff]  ;;  %v164_v1 = vld [vmem:[#allocation5 + $0x2f8] sm:$0xff] }
  0x33   :  { %764 = vmatpush3.msra.mxu1 %v107_v40  ;;  %728 = vmatpush3.msra.mxu0 %v74_v41  ;;  %v117_v0 = vld [vmem:[#allocation5 + $0x180] sm:$0xff]  ;;  %v58_v3 = vld [vmem:[#allocation2 + $0x18] sm:$0xff]  ;;  %v148_v4 = vld [vmem:[#allocation5 + $0x278] sm:$0xff] }
  0x34   :  { %765 = vmatprep.subr.mxu1 %v122_v42  ;;  %729 = vmatprep.subr.mxu0 %v89_v43  ;;  %v101_v2 = vld [vmem:[#allocation5 + $0x100] sm:$0xff]  ;;  %v163_v6 = vld [vmem:[#allocation5 + $0x2f0] sm:$0xff]  ;;  %v162_v9 = vld [vmem:[#allocation5 + $0x2e8] sm:$0xff] }
  0x35   :  { %766 = vmatpush3.msra.mxu1 %v106_v44  ;;  %730 = vmatpush3.msra.mxu0 %v73_v45  ;;  %v57_v5 = vld [vmem:[#allocation2 + $0x10] sm:$0xff]  ;;  %v147_v7 = vld [vmem:[#allocation5 + $0x270] sm:$0xff]  ;;  %v62_v10 = vld [vmem:[#allocation2 + $0x38] sm:$0xff] }
  0x36   :  { %767 = vmatprep.subr.mxu1 %v121_v46  ;;  %731 = vmatprep.subr.mxu0 %v88_v47  ;;  %v63_v8 = vld [vmem:[#allocation2 + $0x40] sm:$0xff]  ;;  %v146_v11 = vld [vmem:[#allocation5 + $0x268] sm:$0xff]  ;;  %v65_v12 = vld [vmem:[#allocation2 + $0x50] sm:$0xff] }
  0x37   :  { %768 = vmatpush3.msra.mxu1 %v105_v48  ;;  %732 = vmatpush3.msra.mxu0 %v72_v49  ;;  %v161_v13 = vld [vmem:[#allocation5 + $0x2e0] sm:$0xff]  ;;  %v64_v14 = vld [vmem:[#allocation2 + $0x48] sm:$0xff]  ;;  %v166_v16 = vld [vmem:[#allocation5 + $0x308] sm:$0xff] }
  0x38   :  { %769 = vmatprep.subr.mxu1 %v120_v50  ;;  %733 = vmatprep.subr.mxu0 %v87_v51  ;;  %v145_v15 = vld [vmem:[#allocation5 + $0x260] sm:$0xff]  ;;  %v160_v17 = vld [vmem:[#allocation5 + $0x2d8] sm:$0xff]  ;;  %v159_v20 = vld [vmem:[#allocation5 + $0x2d0] sm:$0xff] }
  0x39   :  { %770 = vmatpush3.msra.mxu1 %v104_v52  ;;  %734 = vmatpush3.msra.mxu0 %v71_v53  ;;  %v60_v18 = vld [vmem:[#allocation2 + $0x28] sm:$0xff]  ;;  %v165_v21 = vld [vmem:[#allocation5 + $0x300] sm:$0xff]  ;;  %v143_v22 = vld [vmem:[#allocation5 + $0x250] sm:$0xff] }
  0x3a   :  { %771 = vmatprep.subr.mxu1 %v119_v54  ;;  %735 = vmatprep.subr.mxu0 %v86_v55  ;;  %v144_v19 = vld [vmem:[#allocation5 + $0x258] sm:$0xff]  ;;  %v158_v23 = vld [vmem:[#allocation5 + $0x2c8] sm:$0xff]  ;;  %v61_v24 = vld [vmem:[#allocation2 + $0x30] sm:$0xff] }
  0x3b   :  { %772 = vmatpush3.msra.mxu1 %v103_v56  ;;  %736 = vmatpush3.msra.mxu0 %v70_v57  ;;  %v142_v25 = vld [vmem:[#allocation5 + $0x248] sm:$0xff]  ;;  %v68_v26 = vld [vmem:[#allocation2 + $0x68] sm:$0xff]  ;;  %v157_v27 = vld [vmem:[#allocation5 + $0x2c0] sm:$0xff] }
  0x3c   :  { %773 = vmatprep.subr.mxu1 %v118_v58  ;;  %737 = vmatprep.subr.mxu0 %v85_v59  ;;  %v141_v28 = vld [vmem:[#allocation5 + $0x240] sm:$0xff]  ;;  %v156_v29 = vld [vmem:[#allocation5 + $0x2b8] sm:$0xff]  ;;  %v155_v31 = vld [vmem:[#allocation5 + $0x2b0] sm:$0xff] }
  0x3d   :  { %245 = vmatprep.mubr.f32.mxu0 %v56_v60  ;;  %738 = vmatpush3.msra.mxu0 %v69_v61  ;;  %v140_v30 = vld [vmem:[#allocation5 + $0x238] sm:$0xff]  ;;  %v139_v32 = vld [vmem:[#allocation5 + $0x230] sm:$0xff]  ;;  %v154_v33 = vld [vmem:[#allocation5 + $0x2a8] sm:$0xff] }
  0x3e   :  { %774 = vmatpush3.msra.mxu1 %v102_v62  ;;  %246 = vmatmul.mubr.f32.vlgmr.msra.gmra.mxu0 %v55_v63  ;;  %v138_v34 = vld [vmem:[#allocation5 + $0x228] sm:$0xff]  ;;  %v153_v35 = vld [vmem:[#allocation5 + $0x2a0] sm:$0xff]  ;;  %v152_v37 = vld [vmem:[#allocation5 + $0x298] sm:$0xff] }
  0x3f   :  { %775 = vmatprep.subr.mxu1 %v117_v0  ;;  %783 = vmatprep.subr.mxu0 %v164_v1  ;;  %v137_v36 = vld [vmem:[#allocation5 + $0x220] sm:$0xff]  ;;  %v136_v38 = vld [vmem:[#allocation5 + $0x218] sm:$0xff]  ;;  %v151_v39 = vld [vmem:[#allocation5 + $0x290] sm:$0xff] }
  0x40   :  { %776 = vmatpush3.msra.mxu1 %v101_v2  ;;  %320 = vmatprep.mubr.f32.mxu1 %v58_v3  ;;  %v135_v40 = vld [vmem:[#allocation5 + $0x210] sm:$0xff]  ;;  %v150_v41 = vld [vmem:[#allocation5 + $0x288] sm:$0xff]  ;;  %v149_v43 = vld [vmem:[#allocation5 + $0x280] sm:$0xff] }
  0x41   :  { %784 = vmatpush3.msra.mxu0 %v148_v4  ;;  %321 = vmatmul.mubr.f32.vlgmr.msra.gmra.mxu1 %v57_v5  ;;  %v134_v42 = vld [vmem:[#allocation5 + $0x208] sm:$0xff]  ;;  %v133_v44 = vld [vmem:[#allocation5 + $0x200] sm:$0xff]  ;;  %v59_v45 = vld [vmem:[#allocation2 + $0x20] sm:$0xff] }
  0x42   :  { %785 = vmatprep.subr.mxu0 %v163_v6  ;;  %250 = vmatprep.mubr.f32.mxu0 %v63_v8  ;;  %v67_v46 = vld [vmem:[#allocation2 + $0x60] sm:$0xff]  ;;  %v66_v47 = vld [vmem:[#allocation2 + $0x58] sm:$0xff]  ;;  %v497_v49 = vld [vmem:[%s1181_s3 + $0x70] sm:$0xff] }
  0x43   :  { %786 = vmatpush3.msra.mxu0 %v147_v7  ;;  %325 = vmatprep.mubr.f32.mxu1 %v65_v12  ;;  %v498_v48 = vld [vmem:[%s1181_s3 + $0x78] sm:$0xff]  ;;  %v496_v50 = vld [vmem:[%s1181_s3 + $0x68] sm:$0xff]  ;;  %v495_v51 = vld [vmem:[%s1181_s3 + $0x60] sm:$0xff] }
  0x44   :  { %787 = vmatprep.subr.mxu0 %v162_v9  ;;  %251 = vmatmul.mubr.f32.gmra.mxu0 %v62_v10  ;;  %v494_v52 = vld [vmem:[%s1181_s3 + $0x58] sm:$0xff]  ;;  %v493_v53 = vld [vmem:[%s1181_s3 + $0x50] sm:$0xff]  ;;  %v492_v54 = vld [vmem:[%s1181_s3 + $0x48] sm:$0xff] }
  0x45   :  { %788 = vmatpush3.msra.mxu0 %v146_v11  ;;  %326 = vmatmul.mubr.f32.gmra.mxu1 %v64_v14  ;;  %v491_v55 = vld [vmem:[%s1181_s3 + $0x40] sm:$0xff]  ;;  %v490_v56 = vld [vmem:[%s1181_s3 + $0x38] sm:$0xff]  ;;  %v489_v57 = vld [vmem:[%s1181_s3 + $0x30] sm:$0xff] }
  0x46   :  { %789 = vmatprep.subr.mxu0 %v161_v13  ;;  %861 = vmatprep.subr.mxu1 %v166_v16  ;;  %v488_v58 = vld [vmem:[%s1181_s3 + $0x28] sm:$0xff]  ;;  %v487_v59 = vld [vmem:[%s1181_s3 + $0x20] sm:$0xff]  ;;  %v486_v60 = vld [vmem:[%s1181_s3 + $0x18] sm:$0xff] }
  0x47   :  { %790 = vmatpush3.msra.mxu0 %v145_v15  ;;  %395 = vmatprep.mubr.f32.mxu0 %v60_v18  ;;  %v485_v61 = vld [vmem:[%s1181_s3 + $0x10] sm:$0xff]  ;;  %v484_v62 = vld [vmem:[%s1181_s3 + $0x8] sm:$0xff]  ;;  %v483_v63 = vld [vmem:[%s1181_s3] sm:$0xff] }
  0x48   :  { %791 = vmatprep.subr.mxu0 %v160_v17  ;;  %862 = vmatpush3.msra.mxu1 %v166_v16  ;;  %v598_v0 = vld [vmem:[%s1183_s5 + $0x78] sm:$0xff]  ;;  %v597_v1 = vld [vmem:[%s1183_s5 + $0x70] sm:$0xff]  ;;  %v596_v2 = vld [vmem:[%s1183_s5 + $0x68] sm:$0xff] }
  0x49   :  { %792 = vmatpush3.msra.mxu0 %v144_v19  ;;  %863 = vmatprep.subr.mxu1 %v165_v21  ;;  %v595_v3 = vld [vmem:[%s1183_s5 + $0x60] sm:$0xff]  ;;  %v594_v4 = vld [vmem:[%s1183_s5 + $0x58] sm:$0xff]  ;;  %v593_v5 = vld [vmem:[%s1183_s5 + $0x50] sm:$0xff] }
  0x4a   :  { %793 = vmatprep.subr.mxu0 %v159_v20  ;;  %864 = vmatpush3.msra.mxu1 %v165_v21  ;;  %v592_v6 = vld [vmem:[%s1183_s5 + $0x48] sm:$0xff]  ;;  %v591_v7 = vld [vmem:[%s1183_s5 + $0x40] sm:$0xff]  ;;  %v590_v8 = vld [vmem:[%s1183_s5 + $0x38] sm:$0xff] }
  0x4b   :  { %794 = vmatpush3.msra.mxu0 %v143_v22  ;;  %865 = vmatprep.mubr.msk.f32.mxu1 %vm174_vm0, %v61_v24  ;;  %v589_v9 = vld [vmem:[%s1183_s5 + $0x30] sm:$0xff]  ;;  %v588_v10 = vld [vmem:[%s1183_s5 + $0x28] sm:$0xff]  ;;  %v587_v11 = vld [vmem:[%s1183_s5 + $0x20] sm:$0xff] }
  0x4c   :  { %795 = vmatprep.subr.mxu0 %v158_v23  ;;  %866 = vmatmul.mubr.msk.f32.vlgmr.msra.gmra.mxu1 %vm174_vm0, %v68_v26  ;;  %v702_v19 = vld [vmem:[%s1180_s2] ss:$0 sm:$0xff] }
  0x4d   :  { %796 = vmatpush3.msra.mxu0 %v142_v25  ;;  %868 = vmatprep.subr.mxu1 %v498_v48 }
  0x4e   :  { %797 = vmatprep.subr.mxu0 %v157_v27  ;;  %869 = vmatpush3.msra.mxu1 %v498_v48 }
  0x4f   :  { %798 = vmatpush3.msra.mxu0 %v141_v28  ;;  %870 = vmatprep.subr.mxu1 %v497_v49 }
  0x50   :  { %799 = vmatprep.subr.mxu0 %v156_v29  ;;  %871 = vmatpush3.msra.mxu1 %v497_v49 }
  0x51   :  { %800 = vmatpush3.msra.mxu0 %v140_v30  ;;  %872 = vmatprep.subr.mxu1 %v496_v50 }
  0x52   :  { %801 = vmatprep.subr.mxu0 %v155_v31  ;;  %873 = vmatpush3.msra.mxu1 %v496_v50 }
  0x53   :  { %802 = vmatpush3.msra.mxu0 %v139_v32  ;;  %874 = vmatprep.subr.mxu1 %v495_v51 }
  0x54   :  { %803 = vmatprep.subr.mxu0 %v154_v33  ;;  %875 = vmatpush3.msra.mxu1 %v495_v51 }
  0x55   :  { %804 = vmatpush3.msra.mxu0 %v138_v34  ;;  %876 = vmatprep.subr.mxu1 %v494_v52 }
  0x56   :  { %805 = vmatprep.subr.mxu0 %v153_v35  ;;  %877 = vmatpush3.msra.mxu1 %v494_v52 }
  0x57   :  { %806 = vmatpush3.msra.mxu0 %v137_v36  ;;  %878 = vmatprep.subr.mxu1 %v493_v53 }
  0x58   :  { %807 = vmatprep.subr.mxu0 %v152_v37  ;;  %879 = vmatpush3.msra.mxu1 %v493_v53 }
  0x59   :  { %808 = vmatpush3.msra.mxu0 %v136_v38  ;;  %880 = vmatprep.subr.mxu1 %v492_v54 }
  0x5a   :  { %809 = vmatprep.subr.mxu0 %v151_v39  ;;  %881 = vmatpush3.msra.mxu1 %v492_v54  ;;  %v706_v54 = vld [vmem:[%s1184_s6] ss:$0 sm:$0xff] }
  0x5b   :  { %810 = vmatpush3.msra.mxu0 %v135_v40  ;;  %882 = vmatprep.subr.mxu1 %v491_v55 }
  0x5c   :  { %811 = vmatprep.subr.mxu0 %v150_v41  ;;  %883 = vmatpush3.msra.mxu1 %v491_v55 }
  0x5d   :  { %812 = vmatpush3.msra.mxu0 %v134_v42  ;;  %884 = vmatprep.subr.mxu1 %v490_v56 }
  0x5e   :  { %813 = vmatprep.subr.mxu0 %v149_v43  ;;  %885 = vmatpush3.msra.mxu1 %v490_v56  ;;  %v586_v43 = vld [vmem:[%s1183_s5 + $0x18] sm:$0xff] }
  0x5f   :  { %814 = vmatpush3.msra.mxu0 %v133_v44  ;;  %886 = vmatprep.subr.mxu1 %v489_v57  ;;  %v585_v44 = vld [vmem:[%s1183_s5 + $0x10] sm:$0xff] }
  0x60   :  { %396 = vmatmul.mubr.f32.vlgmr.msra.gmra.mxu0 %v59_v45  ;;  %887 = vmatpush3.msra.mxu1 %v489_v57  ;;  %v584_v45 = vld [vmem:[%s1183_s5 + $0x8] sm:$0xff] }
  0x61   :  { %400 = vmatprep.mubr.f32.mxu0 %v67_v46  ;;  %888 = vmatprep.subr.mxu1 %v488_v58  ;;  %v583_v46 = vld [vmem:[%s1183_s5] sm:$0xff]  ;;  %s1017_s5 = smov [#allocation7]  }
  0x62   :  { %889 = vmatpush3.msra.mxu1 %v488_v58  ;;  %903 = vmatprep.subr.mxu0 %v598_v0  ;;  %s689_s13 = sshll.u32 %s1017_s5, 4  ;;  %s690_s13 = int_to_ptr.vmem [resolvable:$true] %s689_s13 }
  0x63   :  { %890 = vmatprep.subr.mxu1 %v487_v59  ;;  %904 = vmatpush3.msra.mxu0 %v598_v0  ;;  %p990_p11 = scmp.lt.s32.totalorder %s690_s13, %s690_s13 }
  0x64   :  { %401 = vmatmul.mubr.f32.gmra.mxu0 %v66_v47  ;;  %891 = vmatpush3.msra.mxu1 %v487_v59  ;;  %v705_v47 = vld [vmem:[%s1182_s4] ss:$0 sm:$0xff]  ;;  %s985_s4 = scalar_lea.vmem %s690_s13, 256 }
  0x65   :  { %892 = vmatprep.subr.mxu1 %v486_v60  ;;  %905 = vmatprep.subr.mxu0 %v597_v1  ;;  %p986_p10 = scmp.ne.s32.totalorder %s690_s13, %s985_s4  ;;  %p991_p12 = scmp.lt.s32.totalorder %s985_s4, %s985_s4 }
  0x66   :  { %893 = vmatpush3.msra.mxu1 %v486_v60  ;;  %906 = vmatpush3.msra.mxu0 %v597_v1 }
  0x67   :  { %894 = vmatprep.subr.mxu1 %v485_v61  ;;  %907 = vmatprep.subr.mxu0 %v596_v2  ;;  %p992_p13 = por %p991_p12, %p990_p11 }
  0x68   :  { %895 = vmatpush3.msra.mxu1 %v485_v61  ;;  %908 = vmatpush3.msra.mxu0 %v596_v2 }
  0x69   :  { %896 = vmatprep.subr.mxu1 %v484_v62  ;;  %909 = vmatprep.subr.mxu0 %v595_v3  ;;  %p993_p0 = pnand %p992_p13, %p986_p10 }
  0x6a   :  { %897 = vmatpush3.msra.mxu1 %v484_v62  ;;  %910 = vmatpush3.msra.mxu0 %v595_v3 }
  0x6b   :  { %898 = vmatprep.subr.mxu1 %v483_v63  ;;  %911 = vmatprep.subr.mxu0 %v594_v4 }
  0x6c   :  { %899 = vmatpush3.msra.mxu1 %v483_v63  ;;  %912 = vmatpush3.msra.mxu0 %v594_v4 }
  0x6d   :  { %913 = vmatprep.subr.mxu0 %v593_v5 }
  0x6e   :  { %914 = vmatpush3.msra.mxu0 %v593_v5 }
  0x6f   :  { %915 = vmatprep.subr.mxu0 %v592_v6 }
  0x70   :  { %916 = vmatpush3.msra.mxu0 %v592_v6 }
  0x71   :  { %917 = vmatprep.subr.mxu0 %v591_v7 }
  0x72   :  { %918 = vmatpush3.msra.mxu0 %v591_v7 }
  0x73   :  { %919 = vmatprep.subr.mxu0 %v590_v8 }
  0x74   :  { %920 = vmatpush3.msra.mxu0 %v590_v8 }
  0x75   :  { %921 = vmatprep.subr.mxu0 %v589_v9 }
  0x76   :  { %922 = vmatpush3.msra.mxu0 %v589_v9 }
  0x77   :  { %923 = vmatprep.subr.mxu0 %v588_v10 }
  0x78   :  { %924 = vmatpush3.msra.mxu0 %v588_v10 }
  0x79   :  { %925 = vmatprep.subr.mxu0 %v587_v11 }
  0x7a   :  { %926 = vmatpush3.msra.mxu0 %v587_v11 }
  0x7b   :  { %927 = vmatprep.subr.mxu0 %v586_v43 }
  0x7c   :  { %928 = vmatpush3.msra.mxu0 %v586_v43 }
  0x7d   :  { %929 = vmatprep.subr.mxu0 %v585_v44 }
  0x7e   :  { %930 = vmatpush3.msra.mxu0 %v585_v44 }
  0x7f   :  { %931 = vmatprep.subr.mxu0 %v584_v45 }
  0x80   :  { %932 = vmatpush3.msra.mxu0 %v584_v45 }
  0x81   :  { %933 = vmatprep.subr.mxu0 %v583_v46 }
  0x82   :  { %934 = vmatpush3.msra.mxu0 %v583_v46 }
  0xfe   :  { %v739_v12 = vpop.f32.mrf.mxu0 }
 0x100   :  { %v740_v14 = vpop.f32.mrf.mxu0 }
 0x101   :  { %v777_v13 = vpop.f32.mrf.mxu1  ;;  %v741_v18 = vadd.f32 %v740_v14, %v739_v12 }
 0x103   :  { %v778_v15 = vpop.f32.mrf.mxu1  ;;  %v248_v22 = vadd.f32 %v741_v18, %v702_v19 }
 0x104   :  { %v742_v16 = vpop.f32.mrf.mxu0  ;;  %v779_v23 = vadd.f32 %v778_v15, %v777_v13 }
 0x105   :  { %v780_v17 = vpop.f32.mrf.mxu1 }
 0x106   :  { %v743_v20 = vpop.f32.mrf.mxu0  ;;  %v323_v28 = vadd.f32 %v779_v23, %v248_v22 }
 0x107   :  { %v781_v21 = vpop.f32.mrf.mxu1  ;;  %v744_v24 = vadd.f32 %v743_v20, %v742_v16 }
 0x108   :  { %v782_v30 = vadd.f32 %v781_v21, %v780_v17 }
 0x109   :  { %v253_v29 = vadd.f32 %v744_v24, %v702_v19 }
 0x10b   :  { %v328_v36 = vadd.f32 %v782_v30, %v253_v29 }
 0x10c   :  { %v867_v26 = vpop.f32.mrf.mxu1 }
 0x10e   :  { %v472_v33 = vpop.f32.mrf.mxu1 }
 0x120   :  { %v815_v25 = vpop.f32.mrf.mxu0 }
 0x122   :  { %v816_v27 = vpop.f32.mrf.mxu0 }
 0x123   :  { %v817_v31 = vadd.f32 %v816_v27, %v815_v25 }
 0x124   :  { %v818_v32 = vpop.f32.mrf.mxu0 }
 0x125   :  { %v398_v34 = vadd.f32 %v817_v31, %v323_v28 }
 0x126   :  { %v819_v35 = vpop.f32.mrf.mxu0 }
 0x127   :  { %v820_v37 = vadd.f32 %v819_v35, %v818_v32  ;;  %v473_v38 = vadd.f32 %v472_v33, %v398_v34 }
 0x129   :  { %v403_v39 = vadd.f32 %v820_v37, %v328_v36  ;;  %v481_v40 = vmax.f32 %v473_v38, 0.0 }
 0x12b   :  { %v478_v41 = vadd.f32 %v867_v26, %v403_v39  ;;  %900 = vmatprep.mubr.f32.mxu1 %v481_v40 }
 0x12d   :  { %v482_v42 = vmax.f32 %v478_v41, 0.0 }
 0x12f   :  { %901 = vmatmul.mubr.f32.vlgmr.msra.gmra.mxu1 %v482_v42 }
 0x1ef   :  { %v902_v48 = vpop.f32.mrf.mxu1 }
 0x1f0   :  { %v578_v49 = vadd.f32 %v902_v48, %v705_v47 }
 0x1f1   :  { %v572_v50 = vpop.f32.mrf.mxu1 }
 0x1f2   :  { %v573_v51 = vadd.f32 %v705_v47, %v572_v50  ;;  %v582_v53 = vmax.f32 %v578_v49, 0.0 }
 0x1f4   :  { %v581_v52 = vmax.f32 %v573_v51, 0.0 }
 0x1f6   :  { %935 = vmatprep.mubr.f32.mxu0 %v581_v52 }
 0x1f7   :  { %936 = vmatmul.mubr.f32.vlgmr.msra.gmra.mxu0 %v582_v53 }
 0x2b7   :  { %v937_v55 = vpop.f32.mrf.mxu0 }
 0x2b8   :  { %v678_v56 = vadd.f32 %v937_v55, %v706_v54 }
 0x2b9   :  { %v672_v57 = vpop.f32.mrf.mxu0 }
 0x2ba   :  { %v673_v58 = vadd.f32 %v706_v54, %v672_v57  ;;  %683 = vst.msk [vmem:[#allocation7 + $0x8] sm:$0xff] %vm681_vm1, %v678_v56 }
 0x2bc   :  { %682 = vst.msk [vmem:[#allocation7] sm:$0xff] %vm681_vm1, %v673_v58 }
 0x2bd   :  { %996 = shalt.err (!%p993_p0)
}
 0x2be   :  { %695 = dma.vmem_to_hbm [thread:$0]  %s690_s13, 256, %s1185_s7, [#allocation4], %s1015_s11, %s1015_s11, %s1016_s12  }
 0x2bf   :  { %1009 = dma.done.wait [#allocation4], 256  }
 0x2c0   :  { %1010 = vsyncadd [#allocation4], 4294967040 }
 0x2c1   :  { %699 = vsyncpa [#allocation3], 1 }
 0x2c2   :  { %700 = vsyncpa [#allocation6], 1 }
 0x2c3   :  { %701 = vsyncpa [#allocation4], 1 }

</bundles_post_ra>
